<compile_context>
chip_gen: v6e
topology: v6e:2x2x1
jax: 0.10.0
libtpu: 0.0.40
codegen_flags: <defaults>
</compile_context>

<pallas_src>
import jax
import jax.numpy as jnp
from jax.experimental import pallas as pl
from jax.experimental.pallas import tpu as pltpu

HIDDEN = 300
HIDDEN_PAD = 384          # 300 rounded up to a multiple of 128 (lane-dense)
BN_EPS = 1e-5


def _round_up(n, m):
    return ((n + m - 1) // m) * m


def _critic_kernel(state_ref, action_ref, w1t_ref, w2t_ref, w3t_ref, vec_ref,
                   out_ref, haug_ref):
    a_size = action_ref.shape[1]
    out_pad = out_ref.shape[1]

    # Packed per-column vectors (static slices, zero runtime cost).
    gamma = vec_ref[0:1, :HIDDEN_PAD]
    beta = vec_ref[1:2, :HIDDEN_PAD]
    b2 = vec_ref[2:3, :HIDDEN_PAD]
    b3 = vec_ref[3:4, :out_pad]

    # ---- fc1 (bias dropped: it cancels exactly under training-mode BN) ----
    state = state_ref[...].astype(jnp.bfloat16)
    h = jnp.dot(state, w1t_ref[...], preferred_element_type=jnp.float32)

    # ---- BatchNorm1d (training-mode batch stats, centered two-pass variance),
    #      folded affine scale/shift, fused ReLU.  Pad lanes stay exactly 0. ----
    mean = jnp.mean(h, axis=0, keepdims=True)
    d = h - mean
    var = jnp.mean(d * d, axis=0, keepdims=True)
    scale = gamma * jax.lax.rsqrt(var + BN_EPS)
    h = jnp.maximum(d * scale + beta, 0.0)

    # ---- fc2 over concat([h, action], 1) as ONE matmul:
    #      action is written into h's zero pad lanes 300:300+A, and the action
    #      weights live in the matching rows of the combined W2. ----
    haug_ref[...] = h
    haug_ref[:, HIDDEN:HIDDEN + a_size] = action_ref[...]
    h2 = jnp.dot(haug_ref[...].astype(jnp.bfloat16), w2t_ref[...],
                 preferred_element_type=jnp.float32) + b2
    h2 = jnp.maximum(h2, 0.0)

    # ---- fc3 ----
    y = jnp.dot(h2.astype(jnp.bfloat16), w3t_ref[...],
                preferred_element_type=jnp.float32) + b3
    out_ref[...] = y.astype(out_ref.dtype)


def prepare_params(params, output_size):
    """One-time conversion of PyTorch-layout params into kernel-ready layout:
    pre-transposed, action weights folded into the padded rows of W2, zero
    padded to lane-dense widths, weights in bf16, small vectors packed into a
    single f32 (4, width) array.  b1 is intentionally dropped (cancels under
    training-mode BatchNorm)."""
    out_pad = _round_up(output_size, 128)
    vec_w = max(HIDDEN_PAD, out_pad)
    action_size = params["w2"].shape[1] - HIDDEN

    # fc1 weight: (S, 384), pad lanes are zero so h's pad lanes stay zero.
    w1t = jnp.pad(params["w1"].T,
                  ((0, 0), (0, HIDDEN_PAD - HIDDEN))).astype(jnp.bfloat16)

    # Combined fc2 weight: rows 0:300 = hidden part, rows 300:300+A = action
    # part, remaining rows zero.  Shape (384, 384).
    w2t = jnp.zeros((HIDDEN_PAD, HIDDEN_PAD), jnp.float32)
    w2t = w2t.at[:HIDDEN, :HIDDEN].set(params["w2"][:, :HIDDEN].T)
    w2t = w2t.at[HIDDEN:HIDDEN + action_size, :HIDDEN].set(
        params["w2"][:, HIDDEN:].T)
    w2t = w2t.astype(jnp.bfloat16)

    # fc3 weight: (384, out_pad).
    w3t = jnp.pad(params["w3"].T,
                  ((0, HIDDEN_PAD - HIDDEN),
                   (0, out_pad - output_size))).astype(jnp.bfloat16)

    def row(v, n):
        return jnp.pad(v, (0, n - v.shape[0]))

    # Packed small vectors: [gamma, beta, b2, b3] -> single (4, vec_w) f32 DMA.
    vecs = jnp.stack([row(params["gamma"], vec_w),
                      row(params["beta"], vec_w),
                      row(params["b2"], vec_w),
                      row(params["b3"], vec_w)], axis=0)

    return dict(w1t=w1t, w2t=w2t, w3t=w3t, vecs=vecs,
                output_size=output_size)


def critic_forward(state, action, kp):
    """Pallas forward pass. state: (B, S) f32, action: (B, A) f32,
    kp: dict from prepare_params()."""
    B, S = state.shape
    out_pad = kp["w3t"].shape[1]

    inputs = (state, action, kp["w1t"], kp["w2t"], kp["w3t"], kp["vecs"])

    flops = 2 * B * (S * HIDDEN_PAD + HIDDEN_PAD * HIDDEN_PAD
                     + HIDDEN_PAD * out_pad)
    bytes_accessed = (sum(int(x.size) * x.dtype.itemsize for x in inputs)
                      + B * out_pad * 4)
    cost = pl.CostEstimate(flops=flops, transcendentals=HIDDEN_PAD,
                           bytes_accessed=bytes_accessed)

    vmem = pl.BlockSpec(memory_space=pltpu.MemorySpace.VMEM)
    out = pl.pallas_call(
        _critic_kernel,
        out_shape=jax.ShapeDtypeStruct((B, out_pad), jnp.float32),
        in_specs=[vmem] * len(inputs),
        out_specs=vmem,
        scratch_shapes=[pltpu.VMEM((B, HIDDEN_PAD), jnp.float32)],
        cost_estimate=cost,
    )(*inputs)
    return out[:, :kp["output_size"]]


def init_params(key, state_size, action_size, output_size):
    """Deterministic synthetic parameters with the shapes from critic.__init__."""
    ks = jax.random.split(key, 6)

    def linear_init(kw, kb, fan_in, fan_out):
        bound = 1.0 / jnp.sqrt(jnp.float32(fan_in))
        w = jax.random.uniform(kw, (fan_out, fan_in), jnp.float32, -bound, bound)
        b = jax.random.uniform(kb, (fan_out,), jnp.float32, -bound, bound)
        return w, b

    w1, b1 = linear_init(ks[0], ks[1], state_size, HIDDEN)
    w2, b2 = linear_init(ks[2], ks[3], HIDDEN + action_size, HIDDEN)
    w3, b3 = linear_init(ks[4], ks[5], HIDDEN, output_size)
    gamma = jnp.ones((HIDDEN,), jnp.float32)   # BatchNorm1d affine weight
    beta = jnp.zeros((HIDDEN,), jnp.float32)   # BatchNorm1d affine bias
    return dict(w1=w1, b1=b1, w2=w2, b2=b2, w3=w3, b3=b3, gamma=gamma, beta=beta)


def critic_reference(state, action, params):
    """Pure-JAX f32 reference for correctness checking (training-mode BN)."""
    h = state @ params["w1"].T + params["b1"]
    mean = jnp.mean(h, axis=0, keepdims=True)
    var = jnp.mean((h - mean) ** 2, axis=0, keepdims=True)
    h = (h - mean) / jnp.sqrt(var + BN_EPS) * params["gamma"] + params["beta"]
    h = jnp.maximum(h, 0.0)
    x = jnp.concatenate([h, action], axis=1)
    h2 = jnp.maximum(x @ params["w2"].T + params["b2"], 0.0)
    return h2 @ params["w3"].T + params["b3"]


if __name__ == "__main__":
    batch = 8
    state_size = 16
    action_size = 4
    output_size = 1

    key = jax.random.PRNGKey(0)
    k_state, k_action, k_params = jax.random.split(key, 3)
    state = jax.random.normal(k_state, (batch, state_size), jnp.float32)
    action = jax.random.normal(k_action, (batch, action_size), jnp.float32)
    params = init_params(k_params, state_size, action_size, output_size)

    kernel_params = prepare_params(params, output_size)   # one-time layout prep

    out = critic_forward(state, action, kernel_params)
    out = jax.block_until_ready(out)

    ref = critic_reference(state, action, params)
    assert out.shape == (batch, output_size)
    # bf16 weights/activations (f32 accumulation) -> loosened tolerance vs f32 ref.
    assert jnp.allclose(out, ref, atol=5e-2, rtol=5e-2), (out, ref)

    print("KERNEL_OK")
</pallas_src>

<mosaic_0001>
module attributes {stable_mosaic.version = 11 : i64} {
  func.func @_critic_kernel(%arg0: memref<8x16xf32, #tpu.memory_space<vmem>>, %arg1: memref<8x4xf32, #tpu.memory_space<vmem>>, %arg2: memref<16x384xbf16, #tpu.memory_space<vmem>>, %arg3: memref<384x384xbf16, #tpu.memory_space<vmem>>, %arg4: memref<384x128xbf16, #tpu.memory_space<vmem>>, %arg5: memref<4x384xf32, #tpu.memory_space<vmem>>, %arg6: memref<8x128xf32, #tpu.memory_space<vmem>>, %arg7: memref<8x384xf32, #tpu.memory_space<vmem>>) attributes {dimension_semantics = [], scalar_prefetch = 0 : i64, scratch_operands = 1 : i64, tpu.core_type = #tpu.core_type<tc>} {
    %c0 = arith.constant 0 : index
    %c0_0 = arith.constant 0 : index
    %0 = vector.load %arg5[%c0, %c0_0] : memref<4x384xf32, #tpu.memory_space<vmem>>, vector<1x384xf32>
    %c1 = arith.constant 1 : index
    %c0_1 = arith.constant 0 : index
    %1 = vector.load %arg5[%c1, %c0_1] : memref<4x384xf32, #tpu.memory_space<vmem>>, vector<1x384xf32>
    %c2 = arith.constant 2 : index
    %c0_2 = arith.constant 0 : index
    %2 = vector.load %arg5[%c2, %c0_2] : memref<4x384xf32, #tpu.memory_space<vmem>>, vector<1x384xf32>
    %c3 = arith.constant 3 : index
    %c0_3 = arith.constant 0 : index
    %3 = vector.load %arg5[%c3, %c0_3] : memref<4x384xf32, #tpu.memory_space<vmem>>, vector<1x128xf32>
    %c0_4 = arith.constant 0 : index
    %c0_5 = arith.constant 0 : index
    %4 = vector.load %arg0[%c0_4, %c0_5] : memref<8x16xf32, #tpu.memory_space<vmem>>, vector<8x16xf32>
    %5 = arith.truncf %4 : vector<8x16xf32> to vector<8x16xbf16>
    %c0_6 = arith.constant 0 : index
    %c0_7 = arith.constant 0 : index
    %6 = vector.load %arg2[%c0_6, %c0_7] : memref<16x384xbf16, #tpu.memory_space<vmem>>, vector<16x384xbf16>
    %cst = arith.constant dense<0.000000e+00> : vector<8x384xf32>
    %7 = tpu.matmul %5, %6, %cst {dimension_numbers = #tpu.dot_dimension_numbers<[1], [0], [0], [1], [0, 0, 1, 1], [], []>} : vector<8x16xbf16>, vector<16x384xbf16>, vector<8x384xf32> -> vector<8x384xf32>
    %cst_8 = arith.constant dense<0.000000e+00> : vector<384xf32>
    %8 = vector.multi_reduction <add>, %7, %cst_8 [0] : vector<8x384xf32> to vector<384xf32>
    %9 = vector.shape_cast %8 : vector<384xf32> to vector<1x384xf32>
    %cst_9 = arith.constant 8.000000e+00 : f32
    %10 = vector.broadcast %cst_9 : f32 to vector<1x384xf32>
    %11 = arith.divf %9, %10 : vector<1x384xf32>
    %12 = vector.broadcast %11 : vector<1x384xf32> to vector<8x384xf32>
    %13 = arith.subf %7, %12 : vector<8x384xf32>
    %14 = arith.mulf %13, %13 : vector<8x384xf32>
    %cst_10 = arith.constant dense<0.000000e+00> : vector<384xf32>
    %15 = vector.multi_reduction <add>, %14, %cst_10 [0] : vector<8x384xf32> to vector<384xf32>
    %16 = vector.shape_cast %15 : vector<384xf32> to vector<1x384xf32>
    %cst_11 = arith.constant 8.000000e+00 : f32
    %17 = vector.broadcast %cst_11 : f32 to vector<1x384xf32>
    %18 = arith.divf %16, %17 : vector<1x384xf32>
    %cst_12 = arith.constant 9.99999974E-6 : f32
    %19 = vector.broadcast %cst_12 : f32 to vector<1x384xf32>
    %20 = arith.addf %18, %19 : vector<1x384xf32>
    %21 = math.rsqrt %20 : vector<1x384xf32>
    %22 = arith.mulf %0, %21 : vector<1x384xf32>
    %23 = vector.broadcast %22 : vector<1x384xf32> to vector<8x384xf32>
    %24 = arith.mulf %13, %23 : vector<8x384xf32>
    %25 = vector.broadcast %1 : vector<1x384xf32> to vector<8x384xf32>
    %26 = arith.addf %24, %25 : vector<8x384xf32>
    %cst_13 = arith.constant 0.000000e+00 : f32
    %27 = vector.broadcast %cst_13 : f32 to vector<8x384xf32>
    %28 = arith.maximumf %26, %27 : vector<8x384xf32>
    %c0_14 = arith.constant 0 : index
    %c0_15 = arith.constant 0 : index
    %29 = vector.load %arg7[%c0_14, %c0_15] : memref<8x384xf32, #tpu.memory_space<vmem>>, vector<8x384xf32>
    tpu.vector_store %arg7[%c0_14, %c0_15], %28 {strides = array<i32>} : memref<8x384xf32, #tpu.memory_space<vmem>>, vector<8x384xf32>,
    %c0_16 = arith.constant 0 : index
    %c0_17 = arith.constant 0 : index
    %30 = vector.load %arg1[%c0_16, %c0_17] : memref<8x4xf32, #tpu.memory_space<vmem>>, vector<8x4xf32>
    %c0_18 = arith.constant 0 : index
    %c300 = arith.constant 300 : index
    %31 = vector.load %arg7[%c0_18, %c300] : memref<8x384xf32, #tpu.memory_space<vmem>>, vector<8x4xf32>
    tpu.vector_store %arg7[%c0_18, %c300], %30 {strides = array<i32>} : memref<8x384xf32, #tpu.memory_space<vmem>>, vector<8x4xf32>,
    %c0_19 = arith.constant 0 : index
    %c0_20 = arith.constant 0 : index
    %32 = vector.load %arg7[%c0_19, %c0_20] : memref<8x384xf32, #tpu.memory_space<vmem>>, vector<8x384xf32>
    %33 = arith.truncf %32 : vector<8x384xf32> to vector<8x384xbf16>
    %c0_21 = arith.constant 0 : index
    %c0_22 = arith.constant 0 : index
    %34 = vector.load %arg3[%c0_21, %c0_22] : memref<384x384xbf16, #tpu.memory_space<vmem>>, vector<384x384xbf16>
    %cst_23 = arith.constant dense<0.000000e+00> : vector<8x384xf32>
    %35 = tpu.matmul %33, %34, %cst_23 {dimension_numbers = #tpu.dot_dimension_numbers<[1], [0], [0], [1], [0, 0, 1, 1], [], []>} : vector<8x384xbf16>, vector<384x384xbf16>, vector<8x384xf32> -> vector<8x384xf32>
    %36 = vector.broadcast %2 : vector<1x384xf32> to vector<8x384xf32>
    %37 = arith.addf %35, %36 : vector<8x384xf32>
    %cst_24 = arith.constant 0.000000e+00 : f32
    %38 = vector.broadcast %cst_24 : f32 to vector<8x384xf32>
    %39 = arith.maximumf %37, %38 : vector<8x384xf32>
    %40 = arith.truncf %39 : vector<8x384xf32> to vector<8x384xbf16>
    %c0_25 = arith.constant 0 : index
    %c0_26 = arith.constant 0 : index
    %41 = vector.load %arg4[%c0_25, %c0_26] : memref<384x128xbf16, #tpu.memory_space<vmem>>, vector<384x128xbf16>
    %cst_27 = arith.constant dense<0.000000e+00> : vector<8x128xf32>
    %42 = tpu.matmul %40, %41, %cst_27 {dimension_numbers = #tpu.dot_dimension_numbers<[1], [0], [0], [1], [0, 0, 1, 1], [], []>} : vector<8x384xbf16>, vector<384x128xbf16>, vector<8x128xf32> -> vector<8x128xf32>
    %43 = vector.broadcast %3 : vector<1x128xf32> to vector<8x128xf32>
    %44 = arith.addf %42, %43 : vector<8x128xf32>
    %c0_28 = arith.constant 0 : index
    %c0_29 = arith.constant 0 : index
    %45 = vector.load %arg6[%c0_28, %c0_29] : memref<8x128xf32, #tpu.memory_space<vmem>>, vector<8x128xf32>
    tpu.vector_store %arg6[%c0_28, %c0_29], %44 {strides = array<i32>} : memref<8x128xf32, #tpu.memory_space<vmem>>, vector<8x128xf32>,
    return
  }
}

</mosaic_0001>

<bundles_post_ra>
// kernel: tpu_custom_call.1
= control target key start
LH: loop header
LB: loop body
LE: loop exit
PB: predicated region body
PF: predicated region fallthrough
CT: control target
= control target key end

     0   :  { %11 = vsyncpa [#allocation4], 0  ;;  %s1844_s0 = inlined_call_operand.vmem [shape: f32[8,16], index: 0, kind: input, shape index: {}]   ;;  %s1845_s1 = inlined_call_operand.vmem [shape: f32[8,4], index: 1, kind: input, shape index: {}]   ;;  %s1846_s2 = inlined_call_operand.hbm [shape: bf16[16,384], index: 2, kind: input, shape index: {}]   ;;  %s1847_s3 = inlined_call_operand.hbm [shape: bf16[384,384], index: 3, kind: input, shape index: {}]   ;;  %s1848_s4 = inlined_call_operand.hbm [shape: bf16[384,128], index: 4, kind: input, shape index: {}]   ;;  %s1849_s5 = inlined_call_operand.vmem [shape: f32[4,384], index: 5, kind: input, shape index: {}]   ;;  %s1850_s6 = inlined_call_operand.hbm [shape: f32[8,128], index: 6, kind: output, shape index: {}]  }
   0x1   :  { %12 = vsyncpa [#allocation7], 0 }
   0x2   :  { %13 = vsyncpa [#allocation5], 0  ;;  %s1719_s21 = smov [#allocation6]   ;;  %s1720_s23 = smov [#allocation3]  }
   0x3   :  { %s35_s22 = sshll.u32 %s1719_s21, 4  ;;  %s23_s24 = sshll.u32 %s1720_s23, 4  ;;  %s36_s22 = int_to_ptr.vmem [resolvable:$true] %s35_s22  ;;  %s24_s24 = int_to_ptr.vmem [resolvable:$true] %s23_s24 }
   0x4   :  { %s1641_s25 = scalar_lea.vmem %s36_s22, 9216  ;;  %p1646_p1 = scmp.lt.s32.totalorder %s36_s22, %s36_s22 }
   0x5   :  { %p1642_p0 = scmp.ne.s32.totalorder %s36_s22, %s1641_s25  ;;  %p1647_p2 = scmp.lt.s32.totalorder %s1641_s25, %s1641_s25 }
   0x7   :  { %p1648_p3 = por %p1647_p2, %p1646_p1 }
   0x9   :  { %p1649_p4 = pnand %p1648_p3, %p1642_p0 }
   0xb   :  { %1652 = shalt.err (!%p1649_p4)
}
   0xc   :  { %s1721_s26 = smov 192   ;;  %s1722_s27 = smov 12  }
   0xd   :  { %41 = dma.hbm_to_vmem [thread:$0]  %s1847_s3, 9216, %s36_s22, [#allocation7], %s1721_s26, %s1721_s26, %s1722_s27  }
   0xe   :  { %s1661_s30 = scalar_lea.vmem %s24_s24, 384  ;;  %p1666_p6 = scmp.lt.s32.totalorder %s24_s24, %s24_s24 }
   0xf   :  { %p1662_p5 = scmp.ne.s32.totalorder %s24_s24, %s1661_s30  ;;  %p1667_p7 = scmp.lt.s32.totalorder %s1661_s30, %s1661_s30 }
  0x11   :  { %p1668_p8 = por %p1667_p7, %p1666_p6 }
  0x13   :  { %p1669_p9 = pnand %p1668_p8, %p1662_p5 }
  0x15   :  { %1672 = shalt.err (!%p1669_p9)
}
  0x16   :  { %29 = dma.hbm_to_vmem [thread:$0]  %s1846_s2, 384, %s24_s24, [#allocation4], %s1721_s26, %s1721_s26, %s1722_s27  }
  0x17   :  { %s1723_s9 = smov [#allocation8]  }
  0x18   :  { %s47_s10 = sshll.u32 %s1723_s9, 4  ;;  %s48_s10 = int_to_ptr.vmem [resolvable:$true] %s47_s10 }
  0x19   :  { %s1681_s11 = scalar_lea.vmem %s48_s10, 3072  ;;  %p1686_p11 = scmp.lt.s32.totalorder %s48_s10, %s48_s10 }
  0x1a   :  { %p1682_p10 = scmp.ne.s32.totalorder %s48_s10, %s1681_s11  ;;  %p1687_p12 = scmp.lt.s32.totalorder %s1681_s11, %s1681_s11 }
  0x1c   :  { %p1688_p13 = por %p1687_p12, %p1686_p11 }
  0x1e   :  { %p1689_p0 = pnand %p1688_p13, %p1682_p10 }
  0x20   :  { %1692 = shalt.err (!%p1689_p0)
}
  0x21   :  { %s1724_s3 = smov 64   ;;  %s1725_s12 = smov 4  }
  0x22   :  { %53 = dma.hbm_to_vmem [thread:$0]  %s1848_s4, 3072, %s48_s10, [#allocation7], %s1724_s3, %s1724_s3, %s1725_s12  }
  0x23   :  { %1713 = dma.done.wait [#allocation4], 384  }
  0x24   :  { %1714 = vsyncadd [#allocation4], 4294966912 }
  0x25   :  { %1715 = dma.done.wait [#allocation7], 12288  }
  0x26   :  { %1716 = vsyncadd [#allocation7], 4294955008  ;;  %v1726_v0 = vmov 0   ;;  %v1503_v1 = vld [vmem:[#allocation3 + $0x4] ss:$12 sps:$4 sm:$0xff]   ;;  %v72_v3 = vld [vmem:[%s1844_s0] sm:$0xff] }
  0x27   :  { %130 = vmatprep.mubr.bf16.mxu1 %v1726_v0  ;;  %v1505_v2 = vld [vmem:[#allocation3] ss:$12 sps:$4 sm:$0xff]   ;;  %112 = vmatprep.subr.bf16.mxu1 %v1503_v1  ;;  %v73_v4 = vpack.c.bf16 %v72_v3, %v72_v3  ;;  %v1506_v5 = vld [vmem:[#allocation3 + $0x8] ss:$12 sps:$4 sm:$0xff]   ;;  %vm94_vm0 = vcmask 130048   ;;  %s1727_s4 = smov 44  }
  0x28   :  { %v306_v6 = vld [vmem:[%s1845_s1] sm:$0xff]  ;;  %113 = vmatpush1.bf16.msra.mxu1 %v1505_v2  ;;  %v1728_v7 = vmov 0.0   ;;  %vm1729_vm1 = vmmov 0   ;;  %v1507_v8 = vld [vmem:[#allocation6 + $0xac] ss:$12 sps:$4 sm:$0xff]   ;;  %vm311_vm2 = vcmask 392544  }
  0x29   :  { %308 = vrot.lane.b32.xlu0 %v306_v6, %s1727_s4  ;;  %1444 = vmatprep.subr.bf16.mxu1 %v1728_v7  ;;  %v1509_v9 = vld [vmem:[#allocation6 + $0xa8] ss:$12 sps:$4 sm:$0xff]   ;;  %v1512_v11 = vld [vmem:[#allocation6 + $0x90] ss:$12 sps:$4 sm:$0xff]   ;;  %v1515_v13 = vld [vmem:[#allocation6 + $0x78] ss:$12 sps:$4 sm:$0xff]  }
  0x2a   :  { %815 = vmatprep.subr.bf16.mxu0 %v1507_v8  ;;  %v1510_v10 = vld [vmem:[#allocation6 + $0x94] ss:$12 sps:$4 sm:$0xff]   ;;  %v1513_v12 = vld [vmem:[#allocation6 + $0x7c] ss:$12 sps:$4 sm:$0xff]   ;;  %v1516_v14 = vld [vmem:[#allocation6 + $0x64] ss:$12 sps:$4 sm:$0xff]  }
  0x2b   :  { %1281 = vmatmul.mubr.msk.bf16.vlgmr.msra.gmra.mxu1 %vm94_vm0, %v73_v4  ;;  %816 = vmatpush1.bf16.msra.mxu0 %v1509_v9  ;;  %v1518_v15 = vld [vmem:[#allocation6 + $0x60] ss:$12 sps:$4 sm:$0xff]   ;;  %v1521_v17 = vld [vmem:[#allocation6 + $0x48] ss:$12 sps:$4 sm:$0xff]   ;;  %v1524_v19 = vld [vmem:[#allocation6 + $0x30] ss:$12 sps:$4 sm:$0xff]  }
  0x2c   :  { %1445 = vmatpush3.bf16.msra.mxu1 %v1506_v5  ;;  %1446 = vmatprep.mubr.msk.bf16.mxu1 %vm1729_vm1, %v1728_v7  ;;  %v1519_v16 = vld [vmem:[#allocation6 + $0x4c] ss:$12 sps:$4 sm:$0xff]   ;;  %v1522_v18 = vld [vmem:[#allocation6 + $0x34] ss:$12 sps:$4 sm:$0xff]   ;;  %v1525_v20 = vld [vmem:[#allocation6 + $0x1c] ss:$12 sps:$4 sm:$0xff]  }
  0x2d   :  { %817 = vmatprep.subr.bf16.mxu0 %v1510_v10  ;;  %v1527_v21 = vld [vmem:[#allocation6 + $0x18] ss:$12 sps:$4 sm:$0xff]   ;;  %v1530_v23 = vld [vmem:[#allocation6] ss:$12 sps:$4 sm:$0xff]   ;;  %v1536_v25 = vld [vmem:[#allocation6 + $0x168] ss:$12 sps:$4 sm:$0xff]  }
  0x2e   :  { %v1528_v22 = vld [vmem:[#allocation6 + $0x4] ss:$12 sps:$4 sm:$0xff]   ;;  %v1531_v24 = vld [vmem:[#allocation6 + $0x16c] ss:$12 sps:$4 sm:$0xff]   ;;  %v1537_v26 = vld [vmem:[#allocation6 + $0x154] ss:$12 sps:$4 sm:$0xff]  }
  0x2f   :  { %818 = vmatpush1.bf16.msra.mxu0 %v1512_v11  ;;  %v1542_v27 = vld [vmem:[#allocation6 + $0x150] ss:$12 sps:$4 sm:$0xff]   ;;  %v1535_v28 = vld [vmem:[#allocation6 + $0x22c] ss:$12 sps:$4 sm:$0xff]   ;;  %v1533_v30 = vld [vmem:[#allocation6 + $0x228] ss:$12 sps:$4 sm:$0xff]  }
  0x30   :  { %819 = vmatprep.subr.bf16.mxu0 %v1513_v12  ;;  %v1543_v29 = vld [vmem:[#allocation6 + $0x13c] ss:$12 sps:$4 sm:$0xff]   ;;  %v1548_v31 = vld [vmem:[#allocation6 + $0x138] ss:$12 sps:$4 sm:$0xff]   ;;  %856 = vmatprep.subr.bf16.mxu1 %v1535_v28  ;;  %v1541_v32 = vld [vmem:[#allocation6 + $0x214] ss:$12 sps:$4 sm:$0xff]  }
  0x31   :  { %v1549_v33 = vld [vmem:[#allocation6 + $0x124] ss:$12 sps:$4 sm:$0xff]   ;;  %v1554_v35 = vld [vmem:[#allocation6 + $0x120] ss:$12 sps:$4 sm:$0xff]   ;;  %v1547_v36 = vld [vmem:[#allocation6 + $0x1fc] ss:$12 sps:$4 sm:$0xff]  }
  0x32   :  { %v1539_v34 = vld [vmem:[#allocation6 + $0x210] ss:$12 sps:$4 sm:$0xff]   ;;  %v1555_v37 = vld [vmem:[#allocation6 + $0x10c] ss:$12 sps:$4 sm:$0xff]   ;;  %v1560_v39 = vld [vmem:[#allocation6 + $0x108] ss:$12 sps:$4 sm:$0xff]  }
  0x33   :  { %1447 = vmatmul.mubr.msk.bf16.vlgmr.msra.gmra.mxu1 %vm94_vm0, %v73_v4  ;;  %820 = vmatpush1.bf16.msra.mxu0 %v1515_v13  ;;  %v1545_v38 = vld [vmem:[#allocation6 + $0x1f8] ss:$12 sps:$4 sm:$0xff]   ;;  %v1561_v41 = vld [vmem:[#allocation6 + $0xf4] ss:$12 sps:$4 sm:$0xff]   ;;  %v1566_v43 = vld [vmem:[#allocation6 + $0xf0] ss:$12 sps:$4 sm:$0xff]  }
  0x34   :  { %888 = vmatprep.mubr.bf16.mxu1 %v1726_v0  ;;  %821 = vmatprep.subr.bf16.mxu0 %v1516_v14  ;;  %v1553_v40 = vld [vmem:[#allocation6 + $0x1e4] ss:$12 sps:$4 sm:$0xff]   ;;  %v1551_v42 = vld [vmem:[#allocation6 + $0x1e0] ss:$12 sps:$4 sm:$0xff]   ;;  %v1567_v45 = vld [vmem:[#allocation6 + $0xdc] ss:$12 sps:$4 sm:$0xff]  }
  0x35   :  { %857 = vmatpush1.bf16.msra.mxu1 %v1533_v30  ;;  %v1559_v44 = vld [vmem:[#allocation6 + $0x1cc] ss:$12 sps:$4 sm:$0xff]   ;;  %v1557_v46 = vld [vmem:[#allocation6 + $0x1c8] ss:$12 sps:$4 sm:$0xff]   ;;  %v1573_v49 = vld [vmem:[#allocation6 + $0xc4] ss:$12 sps:$4 sm:$0xff]  }
  0x36   :  { %858 = vmatprep.subr.bf16.mxu1 %v1541_v32  ;;  %v1572_v47 = vld [vmem:[#allocation6 + $0xd8] ss:$12 sps:$4 sm:$0xff]   ;;  %v1565_v48 = vld [vmem:[#allocation6 + $0x1b4] ss:$12 sps:$4 sm:$0xff]   ;;  %v1563_v50 = vld [vmem:[#allocation6 + $0x1b0] ss:$12 sps:$4 sm:$0xff]  }
  0x37   :  { %822 = vmatpush1.bf16.msra.mxu0 %v1518_v15  ;;  %v1578_v51 = vld [vmem:[#allocation6 + $0xc0] ss:$12 sps:$4 sm:$0xff]   ;;  %v1571_v52 = vld [vmem:[#allocation6 + $0x19c] ss:$12 sps:$4 sm:$0xff]   ;;  %v1569_v53 = vld [vmem:[#allocation6 + $0x198] ss:$12 sps:$4 sm:$0xff]  }
  0x38   :  { %823 = vmatprep.subr.bf16.mxu0 %v1519_v16  ;;  %v1577_v54 = vld [vmem:[#allocation6 + $0x184] ss:$12 sps:$4 sm:$0xff]   ;;  %v1575_v55 = vld [vmem:[#allocation6 + $0x180] ss:$12 sps:$4 sm:$0xff]   ;;  %s1731_s24 = smov [#allocation9]  }
  0x39   :  { %859 = vmatpush1.bf16.msra.mxu1 %v1539_v34  ;;  %v1579_v56 = vld [vmem:[#allocation6 + $0x170] ss:$12 sps:$4 sm:$0xff]   ;;  %s1266_s25 = sshll.u32 %s1731_s24, 4  ;;  %s1267_s25 = int_to_ptr.vmem [resolvable:$true] %s1266_s25 }
  0x3a   :  { %860 = vmatprep.subr.bf16.mxu1 %v1547_v36  ;;  %s1693_s26 = scalar_lea.vmem %s1267_s25, 128  ;;  %p1698_p2 = scmp.lt.s32.totalorder %s1267_s25, %s1267_s25 }
  0x3b   :  { %824 = vmatpush1.bf16.msra.mxu0 %v1521_v17  ;;  %p1694_p1 = scmp.ne.s32.totalorder %s1267_s25, %s1693_s26  ;;  %p1699_p3 = scmp.lt.s32.totalorder %s1693_s26, %s1693_s26 }
  0x3c   :  { %825 = vmatprep.subr.bf16.mxu0 %v1522_v18 }
  0x3d   :  { %861 = vmatpush1.bf16.msra.mxu1 %v1545_v38  ;;  %p1700_p4 = por %p1699_p3, %p1698_p2 }
  0x3e   :  { %862 = vmatprep.subr.bf16.mxu1 %v1553_v40 }
  0x3f   :  { %826 = vmatpush1.bf16.msra.mxu0 %v1524_v19  ;;  %p1701_p5 = pnand %p1700_p4, %p1694_p1 }
  0x40   :  { %827 = vmatprep.subr.bf16.mxu0 %v1525_v20 }
  0x41   :  { %863 = vmatpush1.bf16.msra.mxu1 %v1551_v42 }
  0x42   :  { %864 = vmatprep.subr.bf16.mxu1 %v1559_v44 }
  0x43   :  { %828 = vmatpush1.bf16.msra.mxu0 %v1527_v21 }
  0x44   :  { %829 = vmatprep.subr.bf16.mxu0 %v1528_v22 }
  0x45   :  { %865 = vmatpush1.bf16.msra.mxu1 %v1557_v46 }
  0x46   :  { %866 = vmatprep.subr.bf16.mxu1 %v1565_v48 }
  0x47   :  { %830 = vmatpush1.bf16.msra.mxu0 %v1530_v23 }
  0x48   :  { %831 = vmatprep.subr.bf16.mxu0 %v1531_v24 }
  0x49   :  { %867 = vmatpush1.bf16.msra.mxu1 %v1563_v50 }
  0x4a   :  { %868 = vmatprep.subr.bf16.mxu1 %v1571_v52 }
  0x4b   :  { %832 = vmatpush2.bf16.msra.mxu0 %v1536_v25 }
  0x4c   :  { %833 = vmatprep.subr.bf16.mxu0 %v1537_v26 }
  0x4d   :  { %869 = vmatpush1.bf16.msra.mxu1 %v1569_v53  ;;  %v1730_v53 = vmov 1966171168  }
  0x4e   :  { %870 = vmatprep.subr.bf16.mxu1 %v1577_v54  ;;  %v239_v54 = vunpack.c.l.s4 %v1730_v53  ;;  %v1603_v53 = vld [vmem:[#allocation8 + $0x78] sm:$0xff]  }
  0x4f   :  { %834 = vmatpush2.bf16.msra.mxu0 %v1542_v27 }
  0x50   :  { %835 = vmatprep.subr.bf16.mxu0 %v1543_v29 }
  0x51   :  { %871 = vmatpush1.bf16.msra.mxu1 %v1575_v55  ;;  %v241_v55 = vlaneseq }
  0x52   :  { %1382 = vmatprep.subr.bf16.mxu1 %v1579_v56  ;;  %v240_v56 = vunpack.c.0.s8 %v239_v54  ;;  %v1604_v54 = vld [vmem:[#allocation8 + $0x38] sm:$0xff]  }
  0x53   :  { %836 = vmatpush2.bf16.msra.mxu0 %v1548_v31 }
  0x54   :  { %837 = vmatprep.subr.bf16.mxu0 %v1549_v33 }
  0x57   :  { %838 = vmatpush2.bf16.msra.mxu0 %v1554_v35 }
  0x58   :  { %839 = vmatprep.subr.bf16.mxu0 %v1555_v37 }
  0x5b   :  { %840 = vmatpush2.bf16.msra.mxu0 %v1560_v39 }
  0x5c   :  { %841 = vmatprep.subr.bf16.mxu0 %v1561_v41 }
  0x5f   :  { %842 = vmatpush2.bf16.msra.mxu0 %v1566_v43 }
  0x60   :  { %843 = vmatprep.subr.bf16.mxu0 %v1567_v45 }
  0x63   :  { %844 = vmatpush2.bf16.msra.mxu0 %v1572_v47 }
  0x64   :  { %845 = vmatprep.subr.bf16.mxu0 %v1573_v49 }
  0x67   :  { %846 = vmatpush2.bf16.msra.mxu0 %v1578_v51 }
  0x68   :  { %1450 = vmatprep.subr.bf16.mxu0 %v1728_v7 }
  0xeb   :  { %v132_v57 = vpop.f32.mrf.mxu1 }
  0xec   :  { %v179_v58 = vrot.slane %v132_v57, 4 }
  0xed   :  { %v134_v59 = vpop.f32.mrf.mxu1 }
  0xee   :  { %v180_v60 = vadd.f32 %v179_v58, %v132_v57  ;;  %v185_v61 = vrot.slane %v134_v59, 4 }
  0xef   :  { %v136_v62 = vpop.f32.mrf.mxu1 }
  0xf0   :  { %v181_v63 = vrot.slane %v180_v60, 2  ;;  %v186_v0 = vadd.f32 %v185_v61, %v134_v59 }
  0xf1   :  { %v137_v1 = vpop.f32.mrf.mxu1 }
  0xf2   :  { %v182_v2 = vadd.f32 %v181_v63, %v180_v60  ;;  %v187_v3 = vrot.slane %v186_v0, 2 }
  0xf3   :  { %v173_v4 = vpop.f32.mrf.mxu1 }
  0xf4   :  { %v183_v5 = vrot.slane %v182_v2, 1  ;;  %v188_v6 = vadd.f32 %v187_v3, %v186_v0  ;;  %v191_v8 = vrot.slane %v173_v4, 4  ;;  %v1276_v3 = vld [vmem:[%s1849_s5 + $0x1] ss:$4 sm:$0x7] }
  0xf5   :  { %v1448_v9 = vpop.f32.mrf.mxu1 }
  0xf6   :  { %v184_v10 = vadd.f32 %v183_v5, %v182_v2  ;;  %v189_v11 = vrot.slane %v188_v6, 1  ;;  %v192_v12 = vadd.f32 %v191_v8, %v173_v4  ;;  %v66_v2 = vld [vmem:[%s1849_s5] ss:$4 sm:$0x7] }
  0xf7   :  { %v176_v13 = vpop.f32.mrf.mxu1 }
  0xf8   :  { %v198_v14 = vmul.f32 0.125, %v184_v10  ;;  %v190_v15 = vadd.f32 %v189_v11, %v188_v6  ;;  %v193_v16 = vrot.slane %v192_v12, 2 }
  0xf9   :  { %v1449_v17 = vpop.f32.mrf.mxu1 }
  0xfa   :  { %v1786_v18 = vsub.f32 %v132_v57, %v198_v14  ;;  %v199_v19 = vmul.f32 0.125, %v190_v15  ;;  %v194_v20 = vadd.f32 %v193_v16, %v192_v12  ;;  %v242_v57 = vshrl.u32 %v241_v55, 7  ;;  %v1605_v55 = vld [vmem:[#allocation8 + $0x70] sm:$0xff]  }
  0xfc   :  { %v204_v21 = vmul.f32 %v1786_v18, %v1786_v18  ;;  %v202_v22 = vsub.f32 %v134_v59, %v199_v19  ;;  %v195_v23 = vrot.slane %v194_v20, 1  ;;  %v243_v61 = vsub.s32 %v240_v56, %v242_v57  ;;  %v1606_v56 = vld [vmem:[#allocation8 + $0x30] sm:$0xff]  }
  0xfd   :  { %v1796_v5 = vsub.s32 0, %v242_v57  ;;  %v1798_v6 = vsub.s32 1, %v242_v57  ;;  %v1800_v8 = vsub.s32 2, %v242_v57  ;;  %v1607_v57 = vld [vmem:[#allocation8 + $0x68] sm:$0xff]  }
  0xfe   :  { %v207_v24 = vrot.slane %v204_v21, 4  ;;  %v205_v25 = vmul.f32 %v202_v22, %v202_v22  ;;  %v196_v26 = vadd.f32 %v195_v23, %v194_v20 }
  0xff   :  { %v285_v10 = vrot.slane %v1276_v3, %v1796_v5  ;;  %v289_v11 = vrot.slane %v1276_v3, %v1798_v6  ;;  %v293_v15 = vrot.slane %v1276_v3, %v1800_v8  ;;  %v1617_v3 = vld [vmem:[#allocation8 + $0x40] sm:$0xff]  }
 0x100   :  { %v208_v27 = vadd.f32 %v207_v24, %v204_v21  ;;  %v213_v28 = vrot.slane %v205_v25, 4  ;;  %v200_v29 = vmul.f32 0.125, %v196_v26 }
 0x102   :  { %v209_v30 = vrot.slane %v208_v27, 2  ;;  %v214_v31 = vadd.f32 %v213_v28, %v205_v25  ;;  %v203_v32 = vsub.f32 %v173_v4, %v200_v29 }
 0x104   :  { %v210_v33 = vadd.f32 %v209_v30, %v208_v27  ;;  %v215_v34 = vrot.slane %v214_v31, 2  ;;  %v206_v35 = vmul.f32 %v203_v32, %v203_v32  ;;  %v309_v27 = vpop.permute.xlu0 %308  ;;  %v1581_v30 = vld [vmem:[#allocation6 + $0x230] ss:$12 sps:$4 sm:$0xff]  }
 0x106   :  { %v211_v36 = vrot.slane %v210_v33, 1  ;;  %v216_v37 = vadd.f32 %v215_v34, %v214_v31  ;;  %v219_v38 = vrot.slane %v206_v35, 4  ;;  %v1580_v31 = vld [vmem:[#allocation6 + $0xb0] ss:$12 sps:$4 sm:$0xff]   ;;  %v1587_v34 = vld [vmem:[#allocation6 + $0x200] ss:$12 sps:$4 sm:$0xff]  }
 0x108   :  { %v212_v39 = vadd.f32 %v211_v36, %v210_v33  ;;  %v217_v40 = vrot.slane %v216_v37, 1  ;;  %v220_v41 = vadd.f32 %v219_v38, %v206_v35  ;;  %v1582_v33 = vld [vmem:[#allocation6 + $0x158] ss:$12 sps:$4 sm:$0xff]   ;;  %v1585_v36 = vld [vmem:[#allocation6 + $0x140] ss:$12 sps:$4 sm:$0xff]  }
 0x109   :  { %v1583_v35 = vld [vmem:[#allocation6 + $0x98] ss:$12 sps:$4 sm:$0xff]   ;;  %v1586_v38 = vld [vmem:[#allocation6 + $0x80] ss:$12 sps:$4 sm:$0xff]  }
 0x10a   :  { %v225_v42 = vmul.f32 0.125, %v212_v39  ;;  %v218_v43 = vadd.f32 %v217_v40, %v216_v37  ;;  %v221_v44 = vrot.slane %v220_v41, 2  ;;  %v1590_v37 = vld [vmem:[#allocation6 + $0x1e8] ss:$12 sps:$4 sm:$0xff]   ;;  %v1593_v40 = vld [vmem:[#allocation6 + $0x1d0] ss:$12 sps:$4 sm:$0xff]  }
 0x10b   :  { %v1588_v39 = vld [vmem:[#allocation6 + $0x128] ss:$12 sps:$4 sm:$0xff]  }
 0x10c   :  { %v226_v45 = vmul.f32 0.125, %v218_v43  ;;  %v222_v46 = vadd.f32 %v221_v44, %v220_v41  ;;  %v228_v47 = vadd.f32 1e-05, %v225_v42  ;;  %v1589_v41 = vld [vmem:[#allocation6 + $0x68] ss:$12 sps:$4 sm:$0xff]  }
 0x10d   :  { %v1591_v42 = vld [vmem:[#allocation6 + $0x110] ss:$12 sps:$4 sm:$0xff]   ;;  %v1596_v43 = vld [vmem:[#allocation6 + $0x1b8] ss:$12 sps:$4 sm:$0xff]  }
 0x10e   :  { %v229_v48 = vadd.f32 1e-05, %v226_v45  ;;  %v223_v49 = vrot.slane %v222_v46, 1  ;;  %v1592_v44 = vld [vmem:[#allocation6 + $0x50] ss:$12 sps:$4 sm:$0xff]  }
 0x10f   :  { %v1594_v45 = vld [vmem:[#allocation6 + $0xf8] ss:$12 sps:$4 sm:$0xff]  }
 0x110   :  { %1627 = vrsqrt.f32 %v229_v48  ;;  %v224_v50 = vadd.f32 %v223_v49, %v222_v46  ;;  %v1599_v46 = vld [vmem:[#allocation6 + $0x1a0] ss:$12 sps:$4 sm:$0xff]   ;;  %v1602_v49 = vld [vmem:[#allocation6 + $0x188] ss:$12 sps:$4 sm:$0xff]  }
 0x111   :  { %1629 = vrsqrt.f32 %v228_v47  ;;  %v1595_v47 = vld [vmem:[#allocation6 + $0x38] ss:$12 sps:$4 sm:$0xff]   ;;  %v1597_v48 = vld [vmem:[#allocation6 + $0xe0] ss:$12 sps:$4 sm:$0xff]  }
 0x112   :  { %v227_v51 = vmul.f32 0.125, %v224_v50  ;;  %v1598_v50 = vld [vmem:[#allocation6 + $0x20] ss:$12 sps:$4 sm:$0xff]  }
 0x114   :  { %v230_v52 = vadd.f32 1e-05, %v227_v51  ;;  %v1600_v51 = vld [vmem:[#allocation6 + $0xc8] ss:$12 sps:$4 sm:$0xff]  }
 0x116   :  { %1631 = vrsqrt.f32 %v230_v52  ;;  %v1601_v52 = vld [vmem:[#allocation6 + $0x8] ss:$12 sps:$4 sm:$0xff]  }
 0x11d   :  { %v1628_v58 = vpop.eup %1627 }
 0x11e   :  { %v1630_v59 = vpop.eup %1629 }
 0x11f   :  { %v237_v60 = vcombine.low %v1630_v59, %v1628_v58  ;;  %v1608_v58 = vld [vmem:[#allocation8 + $0x28] sm:$0xff]   ;;  %v1609_v59 = vld [vmem:[#allocation8 + $0x60] sm:$0xff]  }
 0x121   :  { %v244_v63 = vrot.slane %v237_v60, %v243_v61  ;;  %v1610_v60 = vld [vmem:[#allocation8 + $0x20] sm:$0xff]  }
 0x123   :  { %v1632_v62 = vpop.eup %1631 }
 0x124   :  { %v251_v0 = vrot.slane %v1632_v62, %v243_v61  ;;  %v1612_v62 = vld [vmem:[#allocation8 + $0x18] sm:$0xff]  }
 0x126   :  { %v252_v1 = vcombine.low %v244_v63, %v251_v0  ;;  %v1613_v63 = vld [vmem:[#allocation8 + $0x50] sm:$0xff]  }
 0x127   :  { %v1614_v0 = vld [vmem:[#allocation8 + $0x10] sm:$0xff]  }
 0x128   :  { %v259_v4 = vrot.slane %v252_v1, %v243_v61  ;;  %v1611_v61 = vld [vmem:[#allocation8 + $0x58] sm:$0xff]   ;;  %v1615_v1 = vld [vmem:[#allocation8 + $0x48] sm:$0xff]  }
 0x12a   :  { %v261_v9 = vmul.f32 %v259_v4, %v66_v2  ;;  %v1616_v2 = vld [vmem:[#allocation8 + $0x8] sm:$0xff]   ;;  %v1618_v4 = vld [vmem:[#allocation8] sm:$0xff]  }
 0x12c   :  { %v266_v12 = vrot.slane %v261_v9, %v1796_v5  ;;  %v270_v13 = vrot.slane %v261_v9, %v1798_v6  ;;  %v274_v14 = vrot.slane %v261_v9, %v1800_v8  ;;  %v1619_v9 = vld [vmem:[#allocation8 + $0xb8] sm:$0xff]  }
 0x12e   :  { %v278_v16 = vmul.f32 %v266_v12, %v1786_v18  ;;  %v279_v17 = vmul.f32 %v270_v13, %v202_v22  ;;  %v280_v19 = vmul.f32 %v274_v14, %v203_v32  ;;  %v1584_v18 = vld [vmem:[#allocation6 + $0x218] ss:$12 sps:$4 sm:$0xff]   ;;  %v1624_v14 = vld [vmem:[#allocation8 + $0x90] sm:$0xff]  }
 0x12f   :  { %v1622_v12 = vld [vmem:[#allocation8 + $0xa0] sm:$0xff]   ;;  %v1623_v13 = vld [vmem:[#allocation8 + $0x98] sm:$0xff]  }
 0x130   :  { %v297_v20 = vadd.f32 %v285_v10, %v278_v16  ;;  %v298_v21 = vadd.f32 %v289_v11, %v279_v17  ;;  %v299_v23 = vadd.f32 %v293_v15, %v280_v19  ;;  %v1620_v10 = vld [vmem:[#allocation8 + $0xb0] sm:$0xff]   ;;  %v1621_v11 = vld [vmem:[#allocation8 + $0xa8] sm:$0xff]   ;;  %v1626_v16 = vld [vmem:[#allocation8 + $0x80] sm:$0xff]  }
 0x131   :  { %v1625_v15 = vld [vmem:[#allocation8 + $0x88] sm:$0xff]   ;;  %v1277_v17 = vld [vmem:[%s1849_s5 + $0x2] ss:$4 sm:$0x7] }
 0x132   :  { %v300_v24 = vmax.f32 %v297_v20, 0.0  ;;  %v301_v25 = vmax.f32 %v298_v21, 0.0  ;;  %v302_v26 = vmax.f32 %v299_v23, 0.0  ;;  %v419_v21 = vrot.slane %v1277_v17, %v1796_v5 }
 0x134   :  { %305 = vst [vmem:[#allocation2 + $0x10] sm:$0xff] %v302_v26  ;;  %v317_v28 = vpack.c.bf16 %v301_v25, %v301_v25  ;;  %v1809_v29 = vpack.c.bf16 %v300_v24, %v300_v24  ;;  %v423_v24 = vrot.slane %v1277_v17, %v1798_v6 }
 0x135   :  { %312 = vst.msk [vmem:[#allocation2 + $0x10] sm:$0xff] %vm311_vm2, %v309_v27 }
 0x136   :  { %847 = vmatprep.mubr.bf16.mxu0 %v317_v28 }
 0x137   :  { %848 = vmatmul.mubr.bf16.vlgmr.msra.gmra.mxu0 %v1809_v29 }
 0x138   :  { %1451 = vmatpush3.bf16.msra.mxu0 %v1581_v30  ;;  %1466 = vmatprep.mubr.msk.bf16.mxu0 %vm1729_vm1, %v1728_v7 }
 0x139   :  { %1452 = vmatprep.subr.bf16.mxu0 %v1728_v7 }
 0x13c   :  { %v315_v22 = vld [vmem:[#allocation2 + $0x10] sm:$0xff]  ;;  %1453 = vmatpush3.bf16.msra.mxu0 %v1584_v18 }
 0x13d   :  { %v318_v32 = vpack.c.bf16 %v315_v22, %v315_v22  ;;  %1454 = vmatprep.subr.bf16.mxu0 %v1728_v7 }
 0x13f   :  { %889 = vmatmul.mubr.bf16.vlgmr.msra.gmra.mxu1 %v318_v32 }
 0x140   :  { %1383 = vmatpush3.bf16.msra.mxu1 %v1580_v31  ;;  %929 = vmatprep.mubr.bf16.mxu1 %v317_v28 }
 0x141   :  { %1384 = vmatprep.subr.bf16.mxu1 %v1582_v33  ;;  %1455 = vmatpush3.bf16.msra.mxu0 %v1587_v34 }
 0x142   :  { %1456 = vmatprep.subr.bf16.mxu0 %v1728_v7 }
 0x144   :  { %1385 = vmatpush3.bf16.msra.mxu1 %v1583_v35 }
 0x145   :  { %1386 = vmatprep.subr.bf16.mxu1 %v1585_v36  ;;  %1457 = vmatpush3.bf16.msra.mxu0 %v1590_v37 }
 0x146   :  { %1458 = vmatprep.subr.bf16.mxu0 %v1728_v7 }
 0x148   :  { %1387 = vmatpush3.bf16.msra.mxu1 %v1586_v38  ;;  %v427_v38 = vrot.slane %v1277_v17, %v1800_v8 }
 0x149   :  { %1388 = vmatprep.subr.bf16.mxu1 %v1588_v39  ;;  %1459 = vmatpush3.bf16.msra.mxu0 %v1593_v40 }
 0x14a   :  { %1460 = vmatprep.subr.bf16.mxu0 %v1728_v7 }
 0x14c   :  { %1389 = vmatpush3.bf16.msra.mxu1 %v1589_v41 }
 0x14d   :  { %1390 = vmatprep.subr.bf16.mxu1 %v1591_v42  ;;  %1461 = vmatpush3.bf16.msra.mxu0 %v1596_v43 }
 0x14e   :  { %1462 = vmatprep.subr.bf16.mxu0 %v1728_v7 }
 0x150   :  { %1391 = vmatpush3.bf16.msra.mxu1 %v1592_v44 }
 0x151   :  { %1392 = vmatprep.subr.bf16.mxu1 %v1594_v45  ;;  %1463 = vmatpush3.bf16.msra.mxu0 %v1599_v46 }
 0x152   :  { %1464 = vmatprep.subr.bf16.mxu0 %v1728_v7 }
 0x154   :  { %1393 = vmatpush3.bf16.msra.mxu1 %v1595_v47 }
 0x155   :  { %1394 = vmatprep.subr.bf16.mxu1 %v1597_v48  ;;  %1465 = vmatpush3.bf16.msra.mxu0 %v1602_v49 }
 0x156   :  { %1470 = vmatprep.subr.bf16.mxu0 %v1728_v7 }
 0x158   :  { %1395 = vmatpush3.bf16.msra.mxu1 %v1598_v50  ;;  %1467 = vmatmul.mubr.bf16.vlgmr.msra.gmra.mxu0 %v318_v32 }
 0x159   :  { %1396 = vmatprep.subr.bf16.mxu1 %v1600_v51  ;;  %1486 = vmatprep.mubr.msk.bf16.mxu0 %vm1729_vm1, %v1728_v7 }
 0x15a   :  { %1471 = vmatpush3.bf16.msra.mxu0 %v1619_v9 }
 0x15b   :  { %1472 = vmatprep.subr.bf16.mxu0 %v1728_v7 }
 0x15c   :  { %1397 = vmatpush3.bf16.msra.mxu1 %v1601_v52  ;;  %v1355_v52 = vld [vmem:[%s1849_s5 + $0x3] ss:$0 sm:$0xff] }
 0x15d   :  { %1413 = vmatprep.subr.bf16.mxu1 %v1603_v53 }
 0x15e   :  { %1473 = vmatpush3.bf16.msra.mxu0 %v1620_v10 }
 0x15f   :  { %930 = vmatmul.mubr.bf16.vlgmr.msra.gmra.mxu1 %v1809_v29  ;;  %1474 = vmatprep.subr.bf16.mxu0 %v1728_v7 }
 0x160   :  { %1414 = vmatpush3.bf16.msra.mxu1 %v1604_v54 }
 0x161   :  { %1415 = vmatprep.subr.bf16.mxu1 %v1605_v55 }
 0x162   :  { %1475 = vmatpush3.bf16.msra.mxu0 %v1621_v11 }
 0x163   :  { %1476 = vmatprep.subr.bf16.mxu0 %v1728_v7 }
 0x164   :  { %1416 = vmatpush3.bf16.msra.mxu1 %v1606_v56 }
 0x165   :  { %1417 = vmatprep.subr.bf16.mxu1 %v1607_v57 }
 0x166   :  { %1477 = vmatpush3.bf16.msra.mxu0 %v1622_v12 }
 0x167   :  { %1478 = vmatprep.subr.bf16.mxu0 %v1728_v7 }
 0x168   :  { %1418 = vmatpush3.bf16.msra.mxu1 %v1608_v58 }
 0x169   :  { %1419 = vmatprep.subr.bf16.mxu1 %v1609_v59 }
 0x16a   :  { %1479 = vmatpush3.bf16.msra.mxu0 %v1623_v13 }
 0x16b   :  { %1480 = vmatprep.subr.bf16.mxu0 %v1728_v7 }
 0x16c   :  { %1420 = vmatpush3.bf16.msra.mxu1 %v1610_v60 }
 0x16d   :  { %1421 = vmatprep.subr.bf16.mxu1 %v1611_v61 }
 0x16e   :  { %1481 = vmatpush3.bf16.msra.mxu0 %v1624_v14 }
 0x16f   :  { %1482 = vmatprep.subr.bf16.mxu0 %v1728_v7 }
 0x170   :  { %1422 = vmatpush3.bf16.msra.mxu1 %v1612_v62 }
 0x171   :  { %1423 = vmatprep.subr.bf16.mxu1 %v1613_v63 }
 0x172   :  { %1483 = vmatpush3.bf16.msra.mxu0 %v1625_v15 }
 0x173   :  { %1484 = vmatprep.subr.bf16.mxu0 %v1728_v7 }
 0x174   :  { %1424 = vmatpush3.bf16.msra.mxu1 %v1614_v0 }
 0x175   :  { %1425 = vmatprep.subr.bf16.mxu1 %v1615_v1 }
 0x176   :  { %1485 = vmatpush3.bf16.msra.mxu0 %v1626_v16 }
 0x178   :  { %1426 = vmatpush3.bf16.msra.mxu1 %v1616_v2 }
 0x179   :  { %1427 = vmatprep.subr.bf16.mxu1 %v1617_v3 }
 0x17c   :  { %1428 = vmatpush3.bf16.msra.mxu1 %v1618_v4 }
 0x1f7   :  { %v849_v19 = vpop.f32.mrf.mxu0 }
 0x1f8   :  { %v850_v26 = vadd.f32 %v849_v19, %v419_v21 }
 0x1f9   :  { %v851_v20 = vpop.f32.mrf.mxu0 }
 0x1fa   :  { %v852_v29 = vadd.f32 %v851_v20, %v423_v24 }
 0x1fb   :  { %v853_v23 = vpop.f32.mrf.mxu0 }
 0x1fd   :  { %v854_v25 = vpop.f32.mrf.mxu0 }
 0x1ff   :  { %v890_v27 = vpop.f32.mrf.mxu1 }
 0x200   :  { %v891_v28 = vadd.f32 %v890_v27, %v850_v26 }
 0x201   :  { %v892_v30 = vpop.f32.mrf.mxu1 }
 0x202   :  { %v893_v7 = vadd.f32 %v892_v30, %v852_v29  ;;  %v977_v18 = vmax.f32 %v891_v28, 0.0 }
 0x203   :  { %v894_v22 = vpop.f32.mrf.mxu1 }
 0x204   :  { %v978_v31 = vmax.f32 %v893_v7, 0.0  ;;  %v980_v34 = vpack.c.bf16 %v977_v18, %v977_v18 }
 0x205   :  { %v895_v32 = vpop.f32.mrf.mxu1 }
 0x206   :  { %v981_v33 = vpack.c.bf16 %v978_v31, %v978_v31 }
 0x208   :  { %1211 = vmatprep.mubr.bf16.mxu1 %v981_v33 }
 0x209   :  { %1212 = vmatmul.mubr.bf16.vlgmr.msra.gmra.mxu1 %v980_v34 }
 0x218   :  { %v971_v35 = vpop.f32.mrf.mxu0 }
 0x21a   :  { %v1468_v5 = vpop.f32.mrf.mxu0 }
 0x21c   :  { %v974_v36 = vpop.f32.mrf.mxu0 }
 0x21e   :  { %v1469_v37 = vpop.f32.mrf.mxu0 }
 0x21f   :  { %v1398_v6 = vpop.f32.mrf.mxu1 }
 0x221   :  { %v1399_v39 = vpop.f32.mrf.mxu1 }
 0x222   :  { %v1400_v40 = vadd.f32 %v1399_v39, %v1398_v6 }
 0x223   :  { %v1401_v41 = vpop.f32.mrf.mxu1 }
 0x224   :  { %v932_v42 = vadd.f32 %v1400_v40, %v427_v38 }
 0x225   :  { %v1402_v43 = vpop.f32.mrf.mxu1 }
 0x226   :  { %v972_v44 = vadd.f32 %v971_v35, %v932_v42 }
 0x228   :  { %v979_v45 = vmax.f32 %v972_v44, 0.0 }
 0x22a   :  { %v982_v46 = vpack.c.bf16 %v979_v45, %v979_v45 }
 0x22c   :  { %1487 = vmatmul.mubr.bf16.vlgmr.msra.gmra.mxu0 %v982_v46 }
 0x2c9   :  { %v1429_v47 = vpop.f32.mrf.mxu1 }
 0x2cb   :  { %v1430_v48 = vpop.f32.mrf.mxu1 }
 0x2cc   :  { %v1431_v51 = vadd.f32 %v1430_v48, %v1429_v47 }
 0x2cd   :  { %v1432_v49 = vpop.f32.mrf.mxu1 }
 0x2ce   :  { %v1214_v8 = vadd.f32 %v1431_v51, %v1355_v52 }
 0x2cf   :  { %v1433_v50 = vpop.f32.mrf.mxu1 }
 0x2ec   :  { %v1253_v53 = vpop.f32.mrf.mxu0 }
 0x2ed   :  { %v1254_v54 = vadd.f32 %v1253_v53, %v1214_v8 }
 0x2ee   :  { %v1488_v55 = vpop.f32.mrf.mxu0 }
 0x2ef   :  { %1259 = vst [vmem:[#allocation9] sm:$0xff] %v1254_v54 }
 0x2f0   :  { %v1256_v56 = vpop.f32.mrf.mxu0 }
 0x2f1   :  { %1704 = shalt.err (!%p1701_p5)
}
 0x2f2   :  { %1269 = dma.vmem_to_hbm [thread:$0]  %s1267_s25, 128, %s1850_s6, [#allocation5]   ;;  %v1489_v57 = vpop.f32.mrf.mxu0 }
 0x2f3   :  { %1717 = dma.done.wait [#allocation5], 128  }
 0x2f4   :  { %1718 = vsyncadd [#allocation5], 4294967168 }
 0x2f5   :  { %1273 = vsyncpa [#allocation4], 1 }
 0x2f6   :  { %1274 = vsyncpa [#allocation7], 1 }
 0x2f7   :  { %1275 = vsyncpa [#allocation5], 1 }

</bundles_post_ra>
